<compile_context>
chip_gen: v5e
topology: v5e:2x2
jax: 0.10.0
libtpu: 0.0.40
codegen_flags: <defaults>
</compile_context>

<pallas_src>
import functools

import jax
import jax.numpy as jnp
import numpy as np
from jax.experimental import pallas as pl
from jax.experimental.pallas import tpu as pltpu


def _freq_block_kernel(x_ref, wt_ref, c_ref, b_ref, o_ref):
    # x_ref:  (TR, D)  compute-dtype input rows
    # wt_ref: (D, D)   pre-transposed projection weight W^T (resident, 1-buffered)
    # c_ref:  (TR, 1)  f32 per-row bias profile  c = irfft((1+1j)*ones(F), n=L)
    # b_ref:  (1, D)   f32 shared bias (resident, 1-buffered)
    # o_ref:  (TR, D)  output rows
    y = jnp.dot(x_ref[...], wt_ref[...], preferred_element_type=jnp.float32)
    o_ref[...] = (y + c_ref[...] * b_ref[...]).astype(o_ref.dtype)


def _bias_profile_vector(L: int) -> np.ndarray:
    # Per-sequence-position weight the shared bias picks up after the inverse FFT.
    F = L // 2 + 1
    return np.fft.irfft((1.0 + 1.0j) * np.ones(F, dtype=np.complex128), n=L)


def _vmem_budget_bytes() -> int:
    # ~3/4 of physical VMEM: ~48 MiB on v7x (64 MiB), ~96 MiB on v5e/v6e (128 MiB).
    try:
        cap = getattr(pltpu.get_tpu_info(), "vmem_capacity_bytes", 64 * 1024 * 1024)
    except Exception:  # interpret mode / info unavailable -> conservative v7x budget
        cap = 64 * 1024 * 1024
    return (cap * 3) // 4


def _vmem_need_bytes(tr, d, x_bytes, out_bytes):
    # x + out double-buffered tiles, W^T single-buffered, c double-buffered, bias.
    return (2 * tr * d * x_bytes + 2 * tr * d * out_bytes
            + d * d * x_bytes + 2 * tr * 4 + d * 4)


def _pick_row_tile(rows, d, x_bytes, out_bytes, budget):
    # Largest tile (best HBM roofline) that fits the VMEM budget; all candidates
    # are multiples of 16 (bf16 sublane packing).  Never falls back to a
    # full-extent block for awkward row counts.
    for tr in (1024, 512, 256, 128, 64, 32, 16):
        if tr <= max(rows, 16) and _vmem_need_bytes(tr, d, x_bytes, out_bytes) <= budget:
            return tr
    return 16


@functools.partial(jax.jit, static_argnames=("compute_dtype",))
def frequency_block(x, weight, bias, compute_dtype=jnp.bfloat16):
    """x: (B, L, D).  weight: (D, D) nn.Linear weight (out, in).  bias: (D,)."""
    B, L, D = x.shape
    out_dtype = x.dtype
    rows = B * L

    # ---- trace-time constant folding (host side) ----
    c_np = np.tile(_bias_profile_vector(L), B).reshape(rows, 1)      # (B*L, 1)
    c = jnp.asarray(c_np, jnp.float32)
    w_t = jnp.transpose(weight).astype(compute_dtype)                # (D, D) = W^T
    b2d = bias.reshape(1, D).astype(jnp.float32)
    x2d = x.reshape(rows, D).astype(compute_dtype)                   # batch folded into rows

    # NOTE: for production, d_model should be a multiple of 128 (lane-dense stores /
    # full MXU tiles); pad d_model at the model level rather than here — padding
    # D=32 -> 128 inside this wrapper would 4x the HBM traffic of a mem-bound kernel.

    x_bytes = jnp.dtype(compute_dtype).itemsize
    o_bytes = jnp.dtype(out_dtype).itemsize
    budget = _vmem_budget_bytes()
    TR = _pick_row_tile(rows, D, x_bytes, o_bytes, budget)

    num_tiles = pl.cdiv(rows, TR)
    rows_p = num_tiles * TR
    if rows_p != rows:  # pad awkward row counts instead of a huge full-extent block
        x2d = jnp.pad(x2d, ((0, rows_p - rows), (0, 0)))
        c = jnp.pad(c, ((0, rows_p - rows), (0, 0)))

    need = _vmem_need_bytes(TR, D, x_bytes, o_bytes)
    vmem_limit = int(min(max(2 * need, 32 * 1024 * 1024), budget))

    out2d = pl.pallas_call(
        _freq_block_kernel,
        out_shape=jax.ShapeDtypeStruct((rows_p, D), out_dtype),
        grid_spec=pltpu.PrefetchScalarGridSpec(
            num_scalar_prefetch=0,
            grid=(num_tiles,),
            in_specs=[
                pl.BlockSpec((TR, D), lambda i: (i, 0)),                               # x rows
                pl.BlockSpec((D, D), lambda i: (0, 0),
                             pipeline_mode=pl.Buffered(1)),                            # W^T, resident
                pl.BlockSpec((TR, 1), lambda i: (i, 0)),                               # c rows (tiny)
                pl.BlockSpec((1, D), lambda i: (0, 0),
                             pipeline_mode=pl.Buffered(1)),                            # bias, resident
            ],
            out_specs=pl.BlockSpec((TR, D), lambda i: (i, 0)),
        ),
        compiler_params=pltpu.CompilerParams(
            dimension_semantics=("parallel",),
            vmem_limit_bytes=vmem_limit,
        ),
        cost_estimate=pl.CostEstimate(
            flops=2 * rows_p * D * D,
            bytes_accessed=rows_p * D * (x_bytes + o_bytes) + D * D * x_bytes + rows_p * 4 + D * 4,
            transcendentals=0,
        ),
    )(x2d, w_t, c, b2d)

    if rows_p != rows:
        out2d = out2d[:rows]
    return out2d.reshape(B, L, D)


def _reference(x, weight, bias):
    # Pure-JAX mirror of the PyTorch forward (rfft -> shared Linear on real/imag -> irfft).
    freq = jnp.fft.rfft(x, axis=1)
    real = jnp.real(freq) @ weight.T + bias
    imag = jnp.imag(freq) @ weight.T + bias
    freq = real + 1j * imag
    return jnp.fft.irfft(freq, n=x.shape[1], axis=1)


if __name__ == "__main__":
    B, L, D = 2, 16, 32  # batch, seq len, d_model (keep_ratio is unused in forward)

    key = jax.random.PRNGKey(0)
    kx, kw, kb = jax.random.split(key, 3)
    x = jax.random.normal(kx, (B, L, D), dtype=jnp.float32)
    # Deterministic synthetic nn.Linear(d_model, d_model) parameters.
    bound = 1.0 / np.sqrt(D)
    weight = jax.random.uniform(kw, (D, D), jnp.float32, -bound, bound)
    bias = jax.random.uniform(kb, (D,), jnp.float32, -bound, bound)

    ref = _reference(x, weight, bias)

    # Exact-math path (f32 streamed operands): tight tolerance vs. the FFT reference.
    out_f32 = jax.block_until_ready(frequency_block(x, weight, bias, compute_dtype=jnp.float32))
    assert out_f32.shape == (B, L, D)
    err_f32 = float(jnp.max(jnp.abs(out_f32 - ref)))
    assert jnp.allclose(out_f32, ref, atol=1e-4, rtol=1e-4), err_f32

    # Default fast path (bf16 streamed operands, f32 accumulate): loosened tolerance.
    out_bf16 = jax.block_until_ready(frequency_block(x, weight, bias))
    assert out_bf16.shape == (B, L, D)
    err_bf16 = float(jnp.max(jnp.abs(out_bf16 - ref)))
    assert jnp.allclose(out_bf16, ref, atol=3e-2, rtol=3e-2), err_bf16

    print("KERNEL_OK")
</pallas_src>

<mosaic_0001>
module attributes {stable_mosaic.version = 11 : i64} {
  func.func @_freq_block_kernel(%arg0: i32, %arg1: memref<32x32xf32, #tpu.memory_space<vmem>>, %arg2: memref<32x32xf32, #tpu.memory_space<vmem>>, %arg3: memref<32x1xf32, #tpu.memory_space<vmem>>, %arg4: memref<1x32xf32, #tpu.memory_space<vmem>>, %arg5: memref<32x32xf32, #tpu.memory_space<vmem>>) attributes {dimension_semantics = [#tpu.dimension_semantics<parallel>], iteration_bounds = array<i64: 1>, scalar_prefetch = 0 : i64, scratch_operands = 0 : i64, tpu.core_type = #tpu.core_type<tc>, window_params = [{transform_indices = @transform_0, window_bounds = array<i64: 32, 32>}, {pipeline_mode = #tpu.pipeline_mode<synchronous>, transform_indices = @transform_1, window_bounds = array<i64: 32, 32>}, {transform_indices = @transform_2, window_bounds = array<i64: 32, 1>}, {pipeline_mode = #tpu.pipeline_mode<synchronous>, transform_indices = @transform_3, window_bounds = array<i64: 1, 32>}, {transform_indices = @transform_4, window_bounds = array<i64: 32, 32>}]} {
    %c0 = arith.constant 0 : index
    %c0_0 = arith.constant 0 : index
    %0 = vector.load %arg1[%c0, %c0_0] : memref<32x32xf32, #tpu.memory_space<vmem>>, vector<32x32xf32>
    %c0_1 = arith.constant 0 : index
    %c0_2 = arith.constant 0 : index
    %1 = vector.load %arg2[%c0_1, %c0_2] : memref<32x32xf32, #tpu.memory_space<vmem>>, vector<32x32xf32>
    %cst = arith.constant dense<0.000000e+00> : vector<32x32xf32>
    %2 = tpu.matmul %0, %1, %cst {dimension_numbers = #tpu.dot_dimension_numbers<[1], [0], [0], [1], [0, 0, 1, 1], [], []>} : vector<32x32xf32>, vector<32x32xf32>, vector<32x32xf32> -> vector<32x32xf32>
    %c0_3 = arith.constant 0 : index
    %c0_4 = arith.constant 0 : index
    %3 = vector.load %arg3[%c0_3, %c0_4] : memref<32x1xf32, #tpu.memory_space<vmem>>, vector<32x1xf32>
    %c0_5 = arith.constant 0 : index
    %c0_6 = arith.constant 0 : index
    %4 = vector.load %arg4[%c0_5, %c0_6] : memref<1x32xf32, #tpu.memory_space<vmem>>, vector<1x32xf32>
    %5 = vector.broadcast %3 : vector<32x1xf32> to vector<32x32xf32>
    %6 = vector.broadcast %4 : vector<1x32xf32> to vector<32x32xf32>
    %7 = arith.mulf %5, %6 : vector<32x32xf32>
    %8 = arith.addf %2, %7 : vector<32x32xf32>
    %c0_7 = arith.constant 0 : index
    %c0_8 = arith.constant 0 : index
    %9 = vector.load %arg5[%c0_7, %c0_8] : memref<32x32xf32, #tpu.memory_space<vmem>>, vector<32x32xf32>
    tpu.vector_store %arg5[%c0_7, %c0_8], %8 {strides = array<i32>} : memref<32x32xf32, #tpu.memory_space<vmem>>, vector<32x32xf32>,
    return
  }
  func.func @transform_0(%arg0: i32) -> (i32, i32) {
    %c0_i32 = arith.constant 0 : i32
    %c0_i32_0 = arith.constant 0 : i32
    return %arg0, %c0_i32 : i32, i32
  }
  func.func @transform_1(%arg0: i32) -> (i32, i32) {
    %c0_i32 = arith.constant 0 : i32
    %c0_i32_0 = arith.constant 0 : i32
    %c0_i32_1 = arith.constant 0 : i32
    return %c0_i32, %c0_i32_0 : i32, i32
  }
  func.func @transform_2(%arg0: i32) -> (i32, i32) {
    %c0_i32 = arith.constant 0 : i32
    %c0_i32_0 = arith.constant 0 : i32
    return %arg0, %c0_i32 : i32, i32
  }
  func.func @transform_3(%arg0: i32) -> (i32, i32) {
    %c0_i32 = arith.constant 0 : i32
    %c0_i32_0 = arith.constant 0 : i32
    %c0_i32_1 = arith.constant 0 : i32
    return %c0_i32, %c0_i32_0 : i32, i32
  }
  func.func @transform_4(%arg0: i32) -> (i32, i32) {
    %c0_i32 = arith.constant 0 : i32
    %c0_i32_0 = arith.constant 0 : i32
    return %arg0, %c0_i32 : i32, i32
  }
}

</mosaic_0001>

<bundles_post_ra>
// kernel: frequency_block.1
= control target key start
LH: loop header
LB: loop body
LE: loop exit
PB: predicated region body
PF: predicated region fallthrough
CT: control target
= control target key end

     0   :  { %s250_s0 = inlined_call_operand.vmem [shape: f32[32,32], index: 0, kind: input, shape index: {}]   ;;  %s251_s1 = inlined_call_operand.vmem [shape: f32[32,32], index: 1, kind: input, shape index: {}]   ;;  %s252_s2 = inlined_call_operand.vmem [shape: f32[32,1], index: 2, kind: input, shape index: {}]   ;;  %s253_s3 = inlined_call_operand.vmem [shape: f32[1,32], index: 3, kind: input, shape index: {}]   ;;  %s254_s4 = inlined_call_operand.hbm [shape: f32[32,32], index: 4, kind: output, shape index: {}]  }
   0x1   :  { %v25_v0 = vld [vmem:[%s251_s1 + $0x18] sm:$0xff]  ;;  %v24_v1 = vld [vmem:[%s251_s1 + $0x10] sm:$0xff]  ;;  %v23_v2 = vld [vmem:[%s251_s1 + $0x8] sm:$0xff] }
   0x2   :  { %83 = vmatpush.msra.mxu0 %v25_v0  ;;  %126 = vmatpush.msra.mxu1 %v25_v0 }
   0x3   :  { %127 = vmatpush.msra.mxu2 %v25_v0  ;;  %128 = vmatpush.msra.mxu3 %v25_v0 }
   0x4   :  { %84 = vmatpush.msra.mxu0 %v24_v1  ;;  %129 = vmatpush.msra.mxu1 %v24_v1 }
   0x5   :  { %130 = vmatpush.msra.mxu2 %v24_v1  ;;  %131 = vmatpush.msra.mxu3 %v24_v1 }
   0x6   :  { %9 = vsyncpa [#allocation3], 0  ;;  %85 = vmatpush.msra.mxu0 %v23_v2  ;;  %132 = vmatpush.msra.mxu1 %v23_v2  ;;  %v28_v3 = vld [vmem:[%s252_s2 + $0x10] sm:$0xff]  ;;  %v26_v4 = vld [vmem:[%s252_s2] sm:$0xff]  ;;  %v171_v6 = vmov 0   ;;  %vm58_vm0 = vcmask 261120  }
   0x7   :  { %133 = vmatpush.msra.mxu2 %v23_v2  ;;  %134 = vmatpush.msra.mxu3 %v23_v2  ;;  %v22_v5 = vld [vmem:[%s251_s1] sm:$0xff]  ;;  %v19_v8 = vld [vmem:[%s250_s0 + $0x8] sm:$0xff]  ;;  %v20_v9 = vld [vmem:[%s250_s0 + $0x10] sm:$0xff]  ;;  %s110_s16 = sshll.u32 %s254_s4, 4  ;;  %s174_s17 = smov 8   ;;  %s111_s16 = int_to_ptr.hbm [resolvable:$true] %s110_s16 }
   0x8   :  { %143 = vset.pattern.permute.xlu1 %v171_v6  ;;  %142 = vset.pattern.permute.xlu0 %v171_v6  ;;  %v18_v7 = vld [vmem:[%s250_s0] sm:$0xff]  ;;  %v21_v10 = vld [vmem:[%s250_s0 + $0x18] sm:$0xff]  ;;  %v27_v12 = vld [vmem:[%s252_s2 + $0x8] sm:$0xff] }
   0x9   :  { %43 = vperm.xlu1 %143, %v28_v3   ;;  %33 = vperm.xlu0 %142, %v26_v4   ;;  %v29_v11 = vld [vmem:[%s252_s2 + $0x18] sm:$0xff]  ;;  %v144_v15 = vld [vmem:[%s253_s3] ss:$0 sm:$0xff]  ;;  %s172_s2 = smov [#allocation2]   ;;  %s173_s3 = smov 128  }
   0xa   :  { %86 = vmatpush.msra.mxu0 %v22_v5  ;;  %135 = vmatpush.msra.mxu1 %v22_v5  ;;  %s108_s13 = sshll.u32 %s172_s2, 4  ;;  %s109_s13 = int_to_ptr.vmem [resolvable:$true] %s108_s13 }
   0xb   :  { %136 = vmatpush.msra.mxu2 %v22_v5  ;;  %137 = vmatpush.msra.mxu3 %v22_v5 }
   0xc   :  { %122 = vmatmul.msk.f32.vlgmr.msra.gmra.mxu0 %vm58_vm0, %v18_v7  ;;  %123 = vmatmul.msk.f32.vlgmr.msra.gmra.mxu1 %vm58_vm0, %v19_v8 }
   0xd   :  { %124 = vmatmul.msk.f32.vlgmr.msra.gmra.mxu2 %vm58_vm0, %v20_v9  ;;  %125 = vmatmul.msk.f32.vlgmr.msra.gmra.mxu3 %vm58_vm0, %v21_v10 }
  0x11   :  { %48 = vperm.xlu1 %143, %v29_v11   ;;  %38 = vperm.xlu0 %142, %v27_v12  }
  0x7b   :  { %v34_v13 = vpop.permute.xlu0 %33  ;;  %v44_v14 = vpop.permute.xlu1 %43 }
  0x7c   :  { %v54_v17 = vmul.f32 %v144_v15, %v34_v13  ;;  %v56_v24 = vmul.f32 %v144_v15, %v44_v14 }
  0x83   :  { %v39_v16 = vpop.permute.xlu0 %38  ;;  %v49_v23 = vpop.permute.xlu1 %48 }
  0x84   :  { %v55_v18 = vmul.f32 %v144_v15, %v39_v16  ;;  %v57_v25 = vmul.f32 %v144_v15, %v49_v23 }
  0x89   :  { %v88_v19 = vpop.f32.mrf.mxu0  ;;  %v91_v20 = vpop.f32.mrf.mxu1 }
  0x8a   :  { %v89_v21 = vadd.f32 %v88_v19, %v54_v17  ;;  %v92_v22 = vadd.f32 %v91_v20, %v55_v18 }
  0x8c   :  { %100 = vst.msk [vmem:[#allocation2] sm:$0xff] %vm58_vm0, %v89_v21 }
  0x8d   :  { %101 = vst.msk [vmem:[#allocation2 + $0x8] sm:$0xff] %vm58_vm0, %v92_v22 }
  0x90   :  { %v94_v26 = vpop.f32.mrf.mxu2  ;;  %v97_v27 = vpop.f32.mrf.mxu3 }
  0x91   :  { %v95_v28 = vadd.f32 %v94_v26, %v56_v24  ;;  %v98_v29 = vadd.f32 %v97_v27, %v57_v25 }
  0x93   :  { %102 = vst.msk [vmem:[#allocation2 + $0x10] sm:$0xff] %vm58_vm0, %v95_v28 }
  0x94   :  { %103 = vst.msk [vmem:[#allocation2 + $0x18] sm:$0xff] %vm58_vm0, %v98_v29 }
  0x95   :  { %116 = dma.vmem_to_hbm [thread:$0]  %s109_s13, 512, %s111_s16, [#allocation3], %s173_s3, %s173_s3, %s174_s17  }
  0x96   :  { %169 = dma.done.wait [#allocation3], 512  }
  0x97   :  { %170 = vsyncadd [#allocation3], 4294966784 }
  0x98   :  { %121 = vsyncpa [#allocation3], 1 }

</bundles_post_ra>
